<compile_context>
chip_gen: v7x
topology: tpu7x:2x2x1
jax: 0.10.0
libtpu: 0.0.40
codegen_flags: <defaults>
</compile_context>

<pallas_src>
import jax
import jax.numpy as jnp
from jax.experimental import pallas as pl
from jax.experimental.pallas import tpu as pltpu

HIDDEN1 = 128       # fc1 out (lane-dense)
HIDDEN2 = 64        # fc2 out (intermediate only; never stored to HBM, no padding needed)
OUT_LANE_PAD = 8    # pad out_dim (e.g. 4) up to 8 columns for the output block


def _round_up(n, m):
    return ((n + m - 1) // m) * m


def _pad2(a, shape):
    """Zero-pad a 2-D array up to `shape` (padded rows/cols contribute nothing)."""
    return jnp.pad(a, [(0, t - s) for s, t in zip(a.shape, shape)])


def policy_mlp_kernel(x_ref, w1_ref, b1_ref, w2_ref, b2_ref, w3_ref, b3_ref, o_ref):
    # Fused 3-layer MLP, all f32 (matmul accumulation forced to f32 on the MXU).
    x = x_ref[...]                                                        # (TILE_B, d_in)
    h1 = jnp.dot(x, w1_ref[...], preferred_element_type=jnp.float32) + b1_ref[...]
    h1 = jnp.maximum(h1, 0.0)                                             # (TILE_B, 128)
    h2 = jnp.dot(h1, w2_ref[...], preferred_element_type=jnp.float32) + b2_ref[...]
    h2 = jnp.maximum(h2, 0.0)                                             # (TILE_B, 64)
    o_ref[...] = (jnp.dot(h2, w3_ref[...], preferred_element_type=jnp.float32)
                  + b3_ref[...]).astype(o_ref.dtype)                      # (TILE_B, 8)


def prepare_params(params):
    """One-time parameter prep (hoisted out of the per-call forward).

    Returns (prepped_params, out_dim). Only w3/b3 are zero-padded (out_dim -> 8 columns);
    padded columns are zero so the real logit columns are unchanged.
    """
    out_dim = params["w3"].shape[1]
    out_pad = _round_up(out_dim, OUT_LANE_PAD)
    prepped = {
        "w1": params["w1"].astype(jnp.float32),                                   # (d_in, 128)
        "b1": params["b1"].reshape(1, -1).astype(jnp.float32),                    # (1, 128)
        "w2": params["w2"].astype(jnp.float32),                                   # (128, 64)
        "b2": params["b2"].reshape(1, -1).astype(jnp.float32),                    # (1, 64)
        "w3": _pad2(params["w3"].astype(jnp.float32),
                    (params["w3"].shape[0], out_pad)),                            # (64, 8)
        "b3": _pad2(params["b3"].reshape(1, -1).astype(jnp.float32), (1, out_pad)),  # (1, 8)
    }
    return prepped, out_dim


def policy_network_forward(x, prepped, out_dim, *, tile_b=1024):
    """x: (batch, input_dim) float32. prepped: output of prepare_params()."""
    B, d_in = x.shape
    w1, b1 = prepped["w1"], prepped["b1"]
    w2, b2 = prepped["w2"], prepped["b2"]
    w3, b3 = prepped["w3"], prepped["b3"]
    out_pad = w3.shape[1]

    # Batch tile: >= one full f32/bf16-friendly tile (16 rows), 16-aligned, clamped to the
    # batch. Ragged last block is handled by Pallas (OOB reads masked, OOB writes dropped).
    tile_b = max(16, min(_round_up(tile_b, 16), _round_up(B, 16)))
    grid = (pl.cdiv(B, tile_b),)

    full = lambda arr: pl.BlockSpec(arr.shape, lambda i: (0, 0))  # grid-invariant (resident)

    flops = 2 * B * (d_in * HIDDEN1 + HIDDEN1 * HIDDEN2 + HIDDEN2 * out_pad)
    bytes_accessed = (
        x.size * 4
        + 4 * (w1.size + b1.size + w2.size + b2.size + w3.size + b3.size)
        + B * out_pad * 4
    )

    out = pl.pallas_call(
        policy_mlp_kernel,
        out_shape=jax.ShapeDtypeStruct((B, out_pad), jnp.float32),
        grid=grid,
        in_specs=[
            pl.BlockSpec((tile_b, d_in), lambda i: (i, 0)),   # x: tiled over batch
            full(w1), full(b1),
            full(w2), full(b2),
            full(w3), full(b3),
        ],
        out_specs=pl.BlockSpec((tile_b, out_pad), lambda i: (i, 0)),  # narrow (8-col) output
        compiler_params=pltpu.CompilerParams(
            dimension_semantics=("parallel",),   # batch tiles shard across TCs (v7x)
        ),
        cost_estimate=pl.CostEstimate(
            flops=flops, transcendentals=0, bytes_accessed=bytes_accessed),
    )(x, w1, b1, w2, b2, w3, b3)

    # Only the (tiny) zero-padded logit columns need slicing; rows are exact (ragged grid).
    return out if out_pad == out_dim else out[:, :out_dim]


def init_params(key, input_dim, output_dim):
    """Deterministic init mimicking nn.Linear default: U(-1/sqrt(fan_in), 1/sqrt(fan_in))."""
    dims = [(input_dim, HIDDEN1), (HIDDEN1, HIDDEN2), (HIDDEN2, output_dim)]
    params = {}
    for i, (fan_in, fan_out) in enumerate(dims, start=1):
        key, kw, kb = jax.random.split(key, 3)
        bound = 1.0 / jnp.sqrt(jnp.float32(fan_in))
        params[f"w{i}"] = jax.random.uniform(kw, (fan_in, fan_out), jnp.float32,
                                             minval=-bound, maxval=bound)
        params[f"b{i}"] = jax.random.uniform(kb, (1, fan_out), jnp.float32,
                                             minval=-bound, maxval=bound)
    return params


def reference_forward(x, params):
    """Pure-JAX f32 reference (PyTorch-equivalent forward)."""
    h1 = jnp.maximum(x @ params["w1"] + params["b1"], 0.0)
    h2 = jnp.maximum(h1 @ params["w2"] + params["b2"], 0.0)
    return h2 @ params["w3"] + params["b3"]


if __name__ == "__main__":
    key = jax.random.PRNGKey(0)
    input_dim, output_dim, batch = 8, 4, 2   # LunarLander-v2: obs=8, actions=4

    kx, kp = jax.random.split(key)
    x = jax.random.normal(kx, (batch, input_dim), dtype=jnp.float32)
    params = init_params(kp, input_dim, output_dim)

    prepped, out_dim = prepare_params(params)
    out = policy_network_forward(x, prepped, out_dim)
    out = jax.block_until_ready(out)
    assert out.shape == (batch, output_dim)

    # All-f32 kernel vs. all-f32 reference (both use the MXU); modest tolerance covers
    # any bf16-pass difference in default matmul precision.
    ref = reference_forward(x, params)
    assert jnp.allclose(out, ref, atol=2e-2, rtol=2e-2), "mismatch vs f32 reference"

    print("KERNEL_OK")
</pallas_src>

<mosaic_0001>
module attributes {stable_mosaic.version = 11 : i64} {
  func.func @policy_mlp_kernel(%arg0: i32, %arg1: memref<16x8xf32, #tpu.memory_space<vmem>>, %arg2: memref<8x128xf32, #tpu.memory_space<vmem>>, %arg3: memref<1x128xf32, #tpu.memory_space<vmem>>, %arg4: memref<128x64xf32, #tpu.memory_space<vmem>>, %arg5: memref<1x64xf32, #tpu.memory_space<vmem>>, %arg6: memref<64x8xf32, #tpu.memory_space<vmem>>, %arg7: memref<1x8xf32, #tpu.memory_space<vmem>>, %arg8: memref<16x8xf32, #tpu.memory_space<vmem>>) attributes {dimension_semantics = [#tpu.dimension_semantics<parallel>], iteration_bounds = array<i64: 1>, scalar_prefetch = 0 : i64, scratch_operands = 0 : i64, tpu.core_type = #tpu.core_type<tc>, window_params = [{transform_indices = @transform_0, window_bounds = array<i64: 16, 8>}, {pipeline_mode = #tpu.pipeline_mode<synchronous>, transform_indices = @transform_1, window_bounds = array<i64: 8, 128>}, {pipeline_mode = #tpu.pipeline_mode<synchronous>, transform_indices = @transform_2, window_bounds = array<i64: 1, 128>}, {pipeline_mode = #tpu.pipeline_mode<synchronous>, transform_indices = @transform_3, window_bounds = array<i64: 128, 64>}, {pipeline_mode = #tpu.pipeline_mode<synchronous>, transform_indices = @transform_4, window_bounds = array<i64: 1, 64>}, {pipeline_mode = #tpu.pipeline_mode<synchronous>, transform_indices = @transform_5, window_bounds = array<i64: 64, 8>}, {pipeline_mode = #tpu.pipeline_mode<synchronous>, transform_indices = @transform_6, window_bounds = array<i64: 1, 8>}, {transform_indices = @transform_7, window_bounds = array<i64: 16, 8>}]} {
    %c0 = arith.constant 0 : index
    %c0_0 = arith.constant 0 : index
    %0 = vector.load %arg1[%c0, %c0_0] : memref<16x8xf32, #tpu.memory_space<vmem>>, vector<16x8xf32>
    %c0_1 = arith.constant 0 : index
    %c0_2 = arith.constant 0 : index
    %1 = vector.load %arg2[%c0_1, %c0_2] : memref<8x128xf32, #tpu.memory_space<vmem>>, vector<8x128xf32>
    %cst = arith.constant dense<0.000000e+00> : vector<16x128xf32>
    %2 = tpu.matmul %0, %1, %cst {dimension_numbers = #tpu.dot_dimension_numbers<[1], [0], [0], [1], [0, 0, 1, 1], [], []>} : vector<16x8xf32>, vector<8x128xf32>, vector<16x128xf32> -> vector<16x128xf32>
    %c0_3 = arith.constant 0 : index
    %c0_4 = arith.constant 0 : index
    %3 = vector.load %arg3[%c0_3, %c0_4] : memref<1x128xf32, #tpu.memory_space<vmem>>, vector<1x128xf32>
    %4 = vector.broadcast %3 : vector<1x128xf32> to vector<16x128xf32>
    %5 = arith.addf %2, %4 : vector<16x128xf32>
    %cst_5 = arith.constant 0.000000e+00 : f32
    %6 = vector.broadcast %cst_5 : f32 to vector<16x128xf32>
    %7 = arith.maximumf %5, %6 : vector<16x128xf32>
    %c0_6 = arith.constant 0 : index
    %c0_7 = arith.constant 0 : index
    %8 = vector.load %arg4[%c0_6, %c0_7] : memref<128x64xf32, #tpu.memory_space<vmem>>, vector<128x64xf32>
    %cst_8 = arith.constant dense<0.000000e+00> : vector<16x64xf32>
    %9 = tpu.matmul %7, %8, %cst_8 {dimension_numbers = #tpu.dot_dimension_numbers<[1], [0], [0], [1], [0, 0, 1, 1], [], []>} : vector<16x128xf32>, vector<128x64xf32>, vector<16x64xf32> -> vector<16x64xf32>
    %c0_9 = arith.constant 0 : index
    %c0_10 = arith.constant 0 : index
    %10 = vector.load %arg5[%c0_9, %c0_10] : memref<1x64xf32, #tpu.memory_space<vmem>>, vector<1x64xf32>
    %11 = vector.broadcast %10 : vector<1x64xf32> to vector<16x64xf32>
    %12 = arith.addf %9, %11 : vector<16x64xf32>
    %cst_11 = arith.constant 0.000000e+00 : f32
    %13 = vector.broadcast %cst_11 : f32 to vector<16x64xf32>
    %14 = arith.maximumf %12, %13 : vector<16x64xf32>
    %c0_12 = arith.constant 0 : index
    %c0_13 = arith.constant 0 : index
    %15 = vector.load %arg6[%c0_12, %c0_13] : memref<64x8xf32, #tpu.memory_space<vmem>>, vector<64x8xf32>
    %cst_14 = arith.constant dense<0.000000e+00> : vector<16x8xf32>
    %16 = tpu.matmul %14, %15, %cst_14 {dimension_numbers = #tpu.dot_dimension_numbers<[1], [0], [0], [1], [0, 0, 1, 1], [], []>} : vector<16x64xf32>, vector<64x8xf32>, vector<16x8xf32> -> vector<16x8xf32>
    %c0_15 = arith.constant 0 : index
    %c0_16 = arith.constant 0 : index
    %17 = vector.load %arg7[%c0_15, %c0_16] : memref<1x8xf32, #tpu.memory_space<vmem>>, vector<1x8xf32>
    %18 = vector.broadcast %17 : vector<1x8xf32> to vector<16x8xf32>
    %19 = arith.addf %16, %18 : vector<16x8xf32>
    %c0_17 = arith.constant 0 : index
    %c0_18 = arith.constant 0 : index
    %20 = vector.load %arg8[%c0_17, %c0_18] : memref<16x8xf32, #tpu.memory_space<vmem>>, vector<16x8xf32>
    tpu.vector_store %arg8[%c0_17, %c0_18], %19 {strides = array<i32>} : memref<16x8xf32, #tpu.memory_space<vmem>>, vector<16x8xf32>,
    return
  }
  func.func @transform_0(%arg0: i32) -> (i32, i32) {
    %c0_i32 = arith.constant 0 : i32
    %c0_i32_0 = arith.constant 0 : i32
    return %arg0, %c0_i32 : i32, i32
  }
  func.func @transform_1(%arg0: i32) -> (i32, i32) {
    %c0_i32 = arith.constant 0 : i32
    %c0_i32_0 = arith.constant 0 : i32
    %c0_i32_1 = arith.constant 0 : i32
    return %c0_i32, %c0_i32_0 : i32, i32
  }
  func.func @transform_2(%arg0: i32) -> (i32, i32) {
    %c0_i32 = arith.constant 0 : i32
    %c0_i32_0 = arith.constant 0 : i32
    %c0_i32_1 = arith.constant 0 : i32
    return %c0_i32, %c0_i32_0 : i32, i32
  }
  func.func @transform_3(%arg0: i32) -> (i32, i32) {
    %c0_i32 = arith.constant 0 : i32
    %c0_i32_0 = arith.constant 0 : i32
    %c0_i32_1 = arith.constant 0 : i32
    return %c0_i32, %c0_i32_0 : i32, i32
  }
  func.func @transform_4(%arg0: i32) -> (i32, i32) {
    %c0_i32 = arith.constant 0 : i32
    %c0_i32_0 = arith.constant 0 : i32
    %c0_i32_1 = arith.constant 0 : i32
    return %c0_i32, %c0_i32_0 : i32, i32
  }
  func.func @transform_5(%arg0: i32) -> (i32, i32) {
    %c0_i32 = arith.constant 0 : i32
    %c0_i32_0 = arith.constant 0 : i32
    %c0_i32_1 = arith.constant 0 : i32
    return %c0_i32, %c0_i32_0 : i32, i32
  }
  func.func @transform_6(%arg0: i32) -> (i32, i32) {
    %c0_i32 = arith.constant 0 : i32
    %c0_i32_0 = arith.constant 0 : i32
    %c0_i32_1 = arith.constant 0 : i32
    return %c0_i32, %c0_i32_0 : i32, i32
  }
  func.func @transform_7(%arg0: i32) -> (i32, i32) {
    %c0_i32 = arith.constant 0 : i32
    %c0_i32_0 = arith.constant 0 : i32
    return %arg0, %c0_i32 : i32, i32
  }
}

</mosaic_0001>

<bundles_post_ra>
// kernel: tpu_custom_call.1
= control target key start
LH: loop header
LB: loop body
LE: loop exit
PB: predicated region body
PF: predicated region fallthrough
CT: control target
= control target key end

     0   :  { %12 = vsyncpa [#allocation3], 0  ;;  %vm37_vm0 = vcmask 64512   ;;  %vm236_vm1 = vcmask 523264   ;;  %s657_s0 = inlined_call_operand.vmem [shape: f32[2,8], index: 0, kind: input, shape index: {}]   ;;  %s658_s1 = inlined_call_operand.vmem [shape: f32[8,128], index: 1, kind: input, shape index: {}]   ;;  %s659_s2 = inlined_call_operand.vmem [shape: f32[1,128], index: 2, kind: input, shape index: {}]   ;;  %s660_s3 = inlined_call_operand.vmem [shape: f32[128,64], index: 3, kind: input, shape index: {}]   ;;  %s661_s4 = inlined_call_operand.vmem [shape: f32[1,64], index: 4, kind: input, shape index: {}]   ;;  %s662_s5 = inlined_call_operand.vmem [shape: f32[64,8], index: 5, kind: input, shape index: {}]   ;;  %s663_s6 = inlined_call_operand.vmem [shape: f32[1,8], index: 6, kind: input, shape index: {}]   ;;  %s664_s7 = inlined_call_operand.hbm [shape: f32[2,8], index: 7, kind: output, shape index: {}]  }
   0x1   :  { %v29_v0 = vld [vmem:[%s658_s1] sm:$0xff]  ;;  %v28_v2 = vld [vmem:[%s657_s0 + $0x8] sm:$0xff]  ;;  %v123_v6 = vld [vmem:[%s660_s3 + $0x10] sm:$0xff] }
   0x2   :  { %v27_v1 = vld [vmem:[%s657_s0] sm:$0xff]  ;;  %374 = vmatprep.subr.mxu0 %v29_v0  ;;  %v122_v4 = vld [vmem:[%s660_s3 + $0x8] sm:$0xff]  ;;  %v124_v7 = vld [vmem:[%s660_s3 + $0x18] sm:$0xff] }
   0x3   :  { %376 = vmatprep.mubr.msk.f32.mxu0 %vm37_vm0, %v27_v1  ;;  %v121_v3 = vld [vmem:[%s660_s3] sm:$0xff]  ;;  %375 = vmatpush3.msra.mxu0 %v29_v0  ;;  %v437_v8 = vpack.c.bf16 %v124_v7, %v123_v6  ;;  %v126_v10 = vld [vmem:[%s660_s3 + $0x28] sm:$0xff]  ;;  %v127_v12 = vld [vmem:[%s660_s3 + $0x30] sm:$0xff] }
   0x4   :  { %v433_v5 = vpack.c.bf16 %v122_v4, %v121_v3  ;;  %377 = vmatmul.mubr.msk.f32.vlgmr.msra.gmra.mrb[0].mxu0 %vm37_vm0, %v28_v2  ;;  %v125_v9 = vld [vmem:[%s660_s3 + $0x20] sm:$0xff]  ;;  %v128_v13 = vld [vmem:[%s660_s3 + $0x38] sm:$0xff]  ;;  %v130_v16 = vld [vmem:[%s660_s3 + $0x48] sm:$0xff] }
   0x5   :  { %v441_v11 = vpack.c.bf16 %v126_v10, %v125_v9  ;;  %v445_v14 = vpack.c.bf16 %v128_v13, %v127_v12  ;;  %v129_v15 = vld [vmem:[%s660_s3 + $0x40] sm:$0xff]  ;;  %v131_v18 = vld [vmem:[%s660_s3 + $0x50] sm:$0xff]  ;;  %v132_v19 = vld [vmem:[%s660_s3 + $0x58] sm:$0xff] }
   0x6   :  { %434 = vmatprep.subr.bf16.mxu1 %v433_v5  ;;  %v449_v17 = vpack.c.bf16 %v130_v16, %v129_v15  ;;  %v453_v20 = vpack.c.bf16 %v132_v19, %v131_v18  ;;  %v133_v21 = vld [vmem:[%s660_s3 + $0x60] sm:$0xff]  ;;  %v134_v22 = vld [vmem:[%s660_s3 + $0x68] sm:$0xff]  ;;  %v135_v24 = vld [vmem:[%s660_s3 + $0x70] sm:$0xff] }
   0x7   :  { %436 = vmatpush3.bf16.msra.mxu1 %v433_v5  ;;  %v457_v23 = vpack.c.bf16 %v134_v22, %v133_v21  ;;  %v136_v25 = vld [vmem:[%s660_s3 + $0x78] sm:$0xff]  ;;  %v221_v27 = vld [vmem:[%s662_s5] sm:$0xff]  ;;  %v222_v28 = vld [vmem:[%s662_s5 + $0x8] sm:$0xff] }
   0x8   :  { %438 = vmatprep.subr.bf16.mxu1 %v437_v8  ;;  %v461_v26 = vpack.c.bf16 %v136_v25, %v135_v24  ;;  %v223_v29 = vld [vmem:[%s662_s5 + $0x10] sm:$0xff]  ;;  %v465_v30 = vpack.c.bf16 %v222_v28, %v221_v27  ;;  %v224_v31 = vld [vmem:[%s662_s5 + $0x18] sm:$0xff]  ;;  %v225_v33 = vld [vmem:[%s662_s5 + $0x20] sm:$0xff] }
   0x9   :  { %v469_v32 = vpack.c.bf16 %v224_v31, %v223_v29  ;;  %v226_v34 = vld [vmem:[%s662_s5 + $0x28] sm:$0xff]  ;;  %v336_v36 = vld [vmem:[%s659_s2] ss:$0 sm:$0xff]  ;;  %v227_v43 = vld [vmem:[%s662_s5 + $0x30] sm:$0xff] }
   0xa   :  { %466 = vmatprep.subr.bf16.mxu0 %v465_v30  ;;  %v473_v35 = vpack.c.bf16 %v226_v34, %v225_v33  ;;  %v228_v44 = vld [vmem:[%s662_s5 + $0x38] sm:$0xff]  ;;  %v339_v46 = vld [vmem:[%s661_s4] ss:$0 sm:$0xff] }
   0xb   :  { %440 = vmatpush3.bf16.msra.mxu1 %v437_v8  ;;  %468 = vmatpush3.bf16.msra.mxu0 %v465_v30  ;;  %v477_v45 = vpack.c.bf16 %v228_v44, %v227_v43  ;;  %v340_v53 = vld [vmem:[%s663_s6] ss:$0 sm:$0xff] }
   0xc   :  { %442 = vmatprep.subr.bf16.mxu1 %v441_v11  ;;  %470 = vmatprep.subr.bf16.mxu0 %v469_v32 }
   0xf   :  { %444 = vmatpush3.bf16.msra.mxu1 %v441_v11  ;;  %472 = vmatpush3.bf16.msra.mxu0 %v469_v32 }
  0x10   :  { %446 = vmatprep.subr.bf16.mxu1 %v445_v14  ;;  %474 = vmatprep.subr.bf16.mxu0 %v473_v35 }
  0x13   :  { %448 = vmatpush3.bf16.msra.mxu1 %v445_v14  ;;  %476 = vmatpush3.bf16.msra.mxu0 %v473_v35 }
  0x14   :  { %450 = vmatprep.subr.bf16.mxu1 %v449_v17  ;;  %478 = vmatprep.subr.bf16.mxu0 %v477_v45 }
  0x17   :  { %452 = vmatpush3.bf16.msra.mxu1 %v449_v17  ;;  %480 = vmatpush3.bf16.msra.mxu0 %v477_v45 }
  0x18   :  { %454 = vmatprep.subr.bf16.mxu1 %v453_v20 }
  0x1b   :  { %456 = vmatpush3.bf16.msra.mxu1 %v453_v20 }
  0x1c   :  { %458 = vmatprep.subr.bf16.mxu1 %v457_v23 }
  0x1f   :  { %460 = vmatpush3.bf16.msra.mxu1 %v457_v23 }
  0x20   :  { %462 = vmatprep.subr.bf16.mxu1 %v461_v26 }
  0x23   :  { %464 = vmatpush3.bf16.msra.mxu1 %v461_v26 }
  0xd7   :  { %v378_v37 = vpop.f32.mrb[0].mxu0 }
  0xd8   :  { %v116_v38 = vadd.f32 %v378_v37, %v336_v36  ;;  %v110_v39 = vpop.f32.mrb[1].mxu0 }
  0xd9   :  { %v111_v40 = vadd.f32 %v336_v36, %v110_v39 }
  0xda   :  { %v120_v42 = vmax.f32 %v116_v38, 0.0 }
  0xdb   :  { %v119_v41 = vmax.f32 %v111_v40, 0.0 }
  0xdd   :  { %411 = vmatprep.mubr.f32.mxu1 %v119_v41 }
  0xde   :  { %412 = vmatmul.mubr.f32.vlgmr.msra.gmra.mrb[0].mxu1 %v120_v42 }
 0x1b1   :  { %v413_v47 = vpop.f32.mrb[0].mxu1 }
 0x1b2   :  { %v216_v48 = vadd.f32 %v413_v47, %v339_v46  ;;  %v210_v49 = vpop.f32.mrb[1].mxu1 }
 0x1b3   :  { %v211_v50 = vadd.f32 %v339_v46, %v210_v49 }
 0x1b4   :  { %v220_v52 = vmax.f32 %v216_v48, 0.0 }
 0x1b5   :  { %v219_v51 = vmax.f32 %v211_v50, 0.0 }
 0x1b7   :  { %430 = vmatprep.mubr.msk.f32.mxu0 %vm236_vm1, %v219_v51 }
 0x1b8   :  { %431 = vmatmul.mubr.msk.f32.vlgmr.msra.gmra.mrb[2].mxu0 %vm236_vm1, %v220_v52 }
 0x28b   :  { %v432_v54 = vpop.f32.mrb[2].mxu0 }
 0x28c   :  { %v315_v55 = vadd.f32 %v432_v54, %v340_v53  ;;  %v309_v56 = vpop.f32.mrb[3].mxu0 }
 0x28d   :  { %v310_v57 = vadd.f32 %v340_v53, %v309_v56 }
 0x28e   :  { %319 = vst.msk [vmem:[#allocation2 + $0x8] sm:$0xff] %vm37_vm0, %v315_v55 }
 0x28f   :  { %318 = vst.msk [vmem:[#allocation2] sm:$0xff] %vm37_vm0, %v310_v57 }
 0x290   :  { %324 = vsyncadd [#allocation3], 224  ;;  %s508_s4 = smov [#allocation2]  }
 0x291   :  { %s325_s5 = sshll.u32 %s508_s4, 4  ;;  %s326_s5 = int_to_ptr.vmem [resolvable:$true] %s325_s5 }
 0x292   :  { %s484_s9 = scalar_lea.vmem %s326_s5, 32  ;;  %s488_s10 = scalar_lea.vmem %s326_s5, 256 }
 0x293   :  { %p485_p0 = scmp.ne.s32.totalorder %s326_s5, %s484_s9  ;;  %p489_p1 = scmp.lt.s32.totalorder %s326_s5, %s326_s5 }
 0x294   :  { %p490_p2 = scmp.lt.s32.totalorder %s488_s10, %s484_s9 }
 0x296   :  { %p491_p3 = por %p490_p2, %p489_p1 }
 0x298   :  { %p492_p4 = pnand %p491_p3, %p485_p0 }
 0x29a   :  { %495 = shalt.err (!%p492_p4)
}
 0x29b   :  { %s496_s11 = scalar_lea.hbm %s664_s7, 32 }
 0x29c   :  { %p497_p5 = scmp.ne.s32.totalorder %s664_s7, %s496_s11  ;;  %p500_p6 = scmp.lt.u32.totalorder %s496_s11, %s664_s7 }
 0x29e   :  { %p502_p7 = pnand %p500_p6, %p497_p5 }
 0x2a0   :  { %505 = shalt.err (!%p502_p7)
}
 0x2a1   :  { %s509_s15 = smov 32   ;;  %s510_s16 = smov 2  }
 0x2a2   :  { %331 = dma.vmem_to_hbm [thread:$0]  %s326_s5, 32, %s664_s7, [#allocation3], %s509_s15, %s509_s15, %s510_s16  }
 0x2a3   :  { %506 = dma.done.wait [#allocation3], 256  }
 0x2a4   :  { %507 = vsyncadd [#allocation3], 4294967040 }
 0x2a5   :  { %335 = vsyncpa [#allocation3], 1 }

</bundles_post_ra>
